<compile_context>
chip_gen: v7x
topology: tpu7x:2x2x1
jax: 0.10.0
libtpu: 0.0.40
codegen_flags: <defaults>
</compile_context>

<pallas_src>
import jax
import jax.numpy as jnp
from jax.experimental import pallas as pl
from jax.experimental.pallas import tpu as pltpu

LN_EPS = 1e-12
_NUM_LOC = 5          # the PyTorch module hardcodes nn.Linear(5, v_hidden_size)
_LOC_PAD = 8          # sublane-aligned storage for the tiny location weights


def _round_up(x, m):
    return pl.cdiv(x, m) * m


def _dsize(dt):
    return jnp.dtype(dt).itemsize


# ----------------------------------------------------------------------------
# One-time capability probe for single-buffered grid-invariant operands.
# ----------------------------------------------------------------------------
_BUFFERED_OK = None


def _probe_kernel(c_ref, o_ref):
    o_ref[...] = c_ref[...]


def _buffered_single_ok():
    """Cached probe: does this jax build accept pipeline_mode=pl.Buffered(1)?"""
    global _BUFFERED_OK
    if _BUFFERED_OK is not None:
        return _BUFFERED_OK
    try:
        c = jnp.zeros((8, 128), jnp.float32)
        out = pl.pallas_call(
            _probe_kernel,
            out_shape=jax.ShapeDtypeStruct((16, 128), jnp.float32),
            grid_spec=pltpu.PrefetchScalarGridSpec(
                num_scalar_prefetch=0,
                grid=(2,),
                in_specs=[pl.BlockSpec((8, 128), lambda i: (0, 0),
                                       pipeline_mode=pl.Buffered(1))],
                out_specs=pl.BlockSpec((8, 128), lambda i: (i, 0)),
            ),
        )(c)
        jax.block_until_ready(out)
        _BUFFERED_OK = True
    except Exception:
        _BUFFERED_OK = False
    return _BUFFERED_OK


# ----------------------------------------------------------------------------
# Kernel
# ----------------------------------------------------------------------------
def _embed_kernel(img_ref, loc_ref, w_img_ref, w_loc_ref, b_ref,
                  gamma_ref, beta_ref, out_ref):
    # Big feature projection on the MXU (bf16 operands by default), f32 accum.
    z = jnp.dot(img_ref[...], w_img_ref[...], preferred_element_type=jnp.float32)
    z = z + b_ref[...]                               # pre-summed (b_img + b_loc)

    # Location projection: K=5 handled as 5 broadcast multiply-adds on the VPU
    # (VALU has slack; avoids padding the MXU K dimension by 128 lanes).
    loc = loc_ref[...].astype(jnp.float32)           # (rt, 8); cols 5..7 are zero
    w_loc = w_loc_ref[...]                           # (8, H) f32; rows 5..7 zero
    for k in range(_NUM_LOC):
        z = z + loc[:, k:k + 1] * w_loc[k:k + 1, :]

    # Two-pass (centered) LayerNorm over the hidden axis, f32 throughout.
    h = z.shape[-1]
    inv_h = 1.0 / h
    mean = jnp.sum(z, axis=-1, keepdims=True) * inv_h
    d = z - mean
    var = jnp.sum(d * d, axis=-1, keepdims=True) * inv_h
    y = d * jax.lax.rsqrt(var + LN_EPS) * gamma_ref[...] + beta_ref[...]

    # TODO(synk): training-mode dropout (pltpu.prng_seed / prng_random_bits
    # masking) intentionally omitted; eval-mode dropout is identity.
    out_ref[...] = y.astype(out_ref.dtype)


# ----------------------------------------------------------------------------
# pallas_call wrapper
# ----------------------------------------------------------------------------
def _vmem_limit_bytes(rt, F, Lp, H, x_dtype, out_dtype, single_buffer_consts):
    wb = 1 if single_buffer_consts else 2
    need = (2 * rt * F * _dsize(x_dtype)              # img tile, double-buffered
            + 2 * rt * Lp * 4                         # loc tile, double-buffered
            + wb * (F * H * _dsize(x_dtype)           # W_img
                    + Lp * H * 4 + 3 * H * 4)         # W_loc + bias/gamma/beta
            + 2 * rt * H * _dsize(out_dtype)          # out tile, double-buffered
            + 2 * rt * H * 4)                         # f32 intermediates headroom
    return int(min(max(need + (8 << 20), 24 << 20), 100 << 20))


def _call_kernel(img, loc, prepped, *, rt, out_dtype):
    rows_p, F = img.shape
    Lp = loc.shape[1]
    H = prepped["w_img"].shape[1]

    single_buffer = _buffered_single_ok()

    def const_spec(shape):
        # Grid-invariant blocks: single-buffer to halve weight residency.
        if single_buffer:
            return pl.BlockSpec(shape, lambda i: (0, 0),
                                pipeline_mode=pl.Buffered(1))
        return pl.BlockSpec(shape, lambda i: (0, 0))

    vmem_limit = _vmem_limit_bytes(rt, F, Lp, H, img.dtype, out_dtype,
                                   single_buffer)

    return pl.pallas_call(
        _embed_kernel,
        out_shape=jax.ShapeDtypeStruct((rows_p, H), out_dtype),
        grid_spec=pltpu.PrefetchScalarGridSpec(
            num_scalar_prefetch=0,
            grid=(rows_p // rt,),
            in_specs=[
                pl.BlockSpec((rt, F), lambda i: (i, 0)),   # image features
                pl.BlockSpec((rt, Lp), lambda i: (i, 0)),  # image locations
                const_spec((F, H)),                        # W_img
                const_spec((Lp, H)),                       # W_loc (padded to 8)
                const_spec((1, H)),                        # b_img + b_loc
                const_spec((1, H)),                        # LN gamma
                const_spec((1, H)),                        # LN beta
            ],
            out_specs=pl.BlockSpec((rt, H), lambda i: (i, 0)),
        ),
        compiler_params=pltpu.CompilerParams(
            dimension_semantics=("parallel",),
            vmem_limit_bytes=vmem_limit,
        ),
    )(img, loc, prepped["w_img"], prepped["w_loc"],
      prepped["bias"], prepped["gamma"], prepped["beta"])


def prepare_params(params, matmul_dtype=jnp.bfloat16):
    """One-time weight-side prep (do NOT redo per call):
       cast W_img to the matmul dtype, pad W_loc to (8, H) f32, pre-sum biases."""
    F, H = params["w_img"].shape
    L = params["w_loc"].shape[0]
    w_loc = jnp.pad(params["w_loc"].astype(jnp.float32),
                    ((0, _LOC_PAD - L), (0, 0)))
    return {
        "w_img": params["w_img"].astype(matmul_dtype),                      # (F, H)
        "w_loc": w_loc,                                                     # (8, H)
        "bias": (params["b_img"] + params["b_loc"]).astype(jnp.float32).reshape(1, H),
        "gamma": params["gamma"].astype(jnp.float32).reshape(1, H),
        "beta": params["beta"].astype(jnp.float32).reshape(1, H),
    }


def bert_image_feature_embeddings(image_feature, image_location, prepped,
                                  *, row_tile=512, out_dtype=None):
    """image_feature: [B, N, F]; image_location: [B, N, 5] -> [B, N, H]."""
    B, N, F = image_feature.shape
    _, _, L = image_location.shape
    H = prepped["w_img"].shape[1]
    Lp = prepped["w_loc"].shape[0]
    matmul_dtype = prepped["w_img"].dtype
    out_dtype = image_feature.dtype if out_dtype is None else out_dtype

    rows = B * N

    # Balanced row tiles (padding < 8 rows per tile); >= 2 grid steps when
    # possible so v7x's two TensorCores both get work.
    n_tiles = max(pl.cdiv(rows, row_tile), 1)
    if rows > 8:
        n_tiles = max(n_tiles, 2)
    rt = _round_up(pl.cdiv(rows, n_tiles), 8)
    rows_p = n_tiles * rt

    # Activations stay separate; matmul operand cast directly from source dtype.
    img = image_feature.reshape(rows, F).astype(matmul_dtype)
    if rows_p != rows:
        img = jnp.pad(img, ((0, rows_p - rows), (0, 0)))
    loc = jnp.pad(image_location.reshape(rows, L).astype(jnp.float32),
                  ((0, rows_p - rows), (0, Lp - L)))    # tiny (rows x 8) copy

    out2d = _call_kernel(img, loc, prepped, rt=rt, out_dtype=out_dtype)
    if rows_p != rows:
        out2d = out2d[:rows]
    return out2d.reshape(B, N, H)


# ----------------------------------------------------------------------------
# Init / reference / test
# ----------------------------------------------------------------------------
def init_params(key, v_feature_size, v_hidden_size, dtype=jnp.float32):
    k1, k2, k3, k4 = jax.random.split(key, 4)
    # Weights stored pre-transposed vs torch: (in_features, out_features).
    return {
        "w_img": jax.random.normal(k1, (v_feature_size, v_hidden_size), dtype) * 0.02,
        "b_img": jax.random.normal(k2, (1, v_hidden_size), dtype) * 0.02,
        "w_loc": jax.random.normal(k3, (_NUM_LOC, v_hidden_size), dtype) * 0.02,
        "b_loc": jax.random.normal(k4, (1, v_hidden_size), dtype) * 0.02,
        "gamma": jnp.ones((1, v_hidden_size), dtype),
        "beta": jnp.zeros((1, v_hidden_size), dtype),
    }


def _reference(image_feature, image_location, params):
    img = image_feature.astype(jnp.float32) @ params["w_img"] + params["b_img"]
    loc = image_location.astype(jnp.float32) @ params["w_loc"] + params["b_loc"]
    z = img + loc
    mean = jnp.mean(z, axis=-1, keepdims=True)
    var = jnp.mean((z - mean) ** 2, axis=-1, keepdims=True)
    return ((z - mean) * jax.lax.rsqrt(var + LN_EPS)) * params["gamma"] + params["beta"]


if __name__ == "__main__":
    B, N = 2, 8            # batch, num image regions -> 16 rows (2 grid steps)
    v_feature_size = 64    # config.v_feature_size
    v_hidden_size = 128    # config.v_hidden_size

    key = jax.random.PRNGKey(0)
    kf, kl, kp = jax.random.split(key, 3)

    image_feature = jax.random.normal(kf, (B, N, v_feature_size), jnp.float32)
    image_location = jax.random.uniform(kl, (B, N, _NUM_LOC), jnp.float32)
    params = init_params(kp, v_feature_size, v_hidden_size)

    ref = _reference(image_feature, image_location, params)

    # Default path: bf16 matmul operands (f32 accumulation + LayerNorm).
    prepped_bf16 = prepare_params(params)                      # one-time prep
    out = bert_image_feature_embeddings(image_feature, image_location, prepped_bf16)
    out = jax.block_until_ready(out)
    assert out.shape == (B, N, v_hidden_size)
    assert bool(jnp.all(jnp.isfinite(out)))
    assert jnp.allclose(out, ref, atol=5e-2, rtol=5e-2), "bf16 mismatch vs reference"

    # Full-f32 matmul path (tight tolerance check).
    prepped_f32 = prepare_params(params, matmul_dtype=jnp.float32)
    out_f32 = bert_image_feature_embeddings(image_feature, image_location, prepped_f32)
    out_f32 = jax.block_until_ready(out_f32)
    assert jnp.allclose(out_f32, ref, atol=1e-4, rtol=1e-4), "f32 mismatch vs reference"

    print("KERNEL_OK")
</pallas_src>

<mosaic_0001>
module attributes {stable_mosaic.version = 11 : i64} {
  func.func @_probe_kernel(%arg0: i32, %arg1: memref<8x128xf32, #tpu.memory_space<vmem>>, %arg2: memref<8x128xf32, #tpu.memory_space<vmem>>) attributes {dimension_semantics = [#tpu.dimension_semantics<arbitrary>], iteration_bounds = array<i64: 2>, scalar_prefetch = 0 : i64, scratch_operands = 0 : i64, tpu.core_type = #tpu.core_type<tc>, window_params = [{pipeline_mode = #tpu.pipeline_mode<synchronous>, transform_indices = @transform_0, window_bounds = array<i64: 8, 128>}, {transform_indices = @transform_1, window_bounds = array<i64: 8, 128>}]} {
    %c0 = arith.constant 0 : index
    %c0_0 = arith.constant 0 : index
    %0 = vector.load %arg1[%c0, %c0_0] : memref<8x128xf32, #tpu.memory_space<vmem>>, vector<8x128xf32>
    %c0_1 = arith.constant 0 : index
    %c0_2 = arith.constant 0 : index
    %1 = vector.load %arg2[%c0_1, %c0_2] : memref<8x128xf32, #tpu.memory_space<vmem>>, vector<8x128xf32>
    tpu.vector_store %arg2[%c0_1, %c0_2], %0 {strides = array<i32>} : memref<8x128xf32, #tpu.memory_space<vmem>>, vector<8x128xf32>,
    return
  }
  func.func @transform_0(%arg0: i32) -> (i32, i32) {
    %c0_i32 = arith.constant 0 : i32
    %c0_i32_0 = arith.constant 0 : i32
    %c0_i32_1 = arith.constant 0 : i32
    return %c0_i32, %c0_i32_0 : i32, i32
  }
  func.func @transform_1(%arg0: i32) -> (i32, i32) {
    %c0_i32 = arith.constant 0 : i32
    %c0_i32_0 = arith.constant 0 : i32
    return %arg0, %c0_i32 : i32, i32
  }
}

module attributes {stable_mosaic.version = 11 : i64} {
  func.func @_embed_kernel(%arg0: i32, %arg1: memref<8x64xbf16, #tpu.memory_space<vmem>>, %arg2: memref<8x8xf32, #tpu.memory_space<vmem>>, %arg3: memref<64x128xbf16, #tpu.memory_space<vmem>>, %arg4: memref<8x128xf32, #tpu.memory_space<vmem>>, %arg5: memref<1x128xf32, #tpu.memory_space<vmem>>, %arg6: memref<1x128xf32, #tpu.memory_space<vmem>>, %arg7: memref<1x128xf32, #tpu.memory_space<vmem>>, %arg8: memref<8x128xf32, #tpu.memory_space<vmem>>) attributes {dimension_semantics = [#tpu.dimension_semantics<parallel>], iteration_bounds = array<i64: 2>, scalar_prefetch = 0 : i64, scratch_operands = 0 : i64, tpu.core_type = #tpu.core_type<tc>, window_params = [{transform_indices = @transform_0, window_bounds = array<i64: 8, 64>}, {transform_indices = @transform_1, window_bounds = array<i64: 8, 8>}, {pipeline_mode = #tpu.pipeline_mode<synchronous>, transform_indices = @transform_2, window_bounds = array<i64: 64, 128>}, {pipeline_mode = #tpu.pipeline_mode<synchronous>, transform_indices = @transform_3, window_bounds = array<i64: 8, 128>}, {pipeline_mode = #tpu.pipeline_mode<synchronous>, transform_indices = @transform_4, window_bounds = array<i64: 1, 128>}, {pipeline_mode = #tpu.pipeline_mode<synchronous>, transform_indices = @transform_5, window_bounds = array<i64: 1, 128>}, {pipeline_mode = #tpu.pipeline_mode<synchronous>, transform_indices = @transform_6, window_bounds = array<i64: 1, 128>}, {transform_indices = @transform_7, window_bounds = array<i64: 8, 128>}]} {
    %c0 = arith.constant 0 : index
    %c0_0 = arith.constant 0 : index
    %0 = vector.load %arg1[%c0, %c0_0] : memref<8x64xbf16, #tpu.memory_space<vmem>>, vector<8x64xbf16>
    %c0_1 = arith.constant 0 : index
    %c0_2 = arith.constant 0 : index
    %1 = vector.load %arg3[%c0_1, %c0_2] : memref<64x128xbf16, #tpu.memory_space<vmem>>, vector<64x128xbf16>
    %cst = arith.constant dense<0.000000e+00> : vector<8x128xf32>
    %2 = tpu.matmul %0, %1, %cst {dimension_numbers = #tpu.dot_dimension_numbers<[1], [0], [0], [1], [0, 0, 1, 1], [], []>} : vector<8x64xbf16>, vector<64x128xbf16>, vector<8x128xf32> -> vector<8x128xf32>
    %c0_3 = arith.constant 0 : index
    %c0_4 = arith.constant 0 : index
    %3 = vector.load %arg5[%c0_3, %c0_4] : memref<1x128xf32, #tpu.memory_space<vmem>>, vector<1x128xf32>
    %4 = vector.broadcast %3 : vector<1x128xf32> to vector<8x128xf32>
    %5 = arith.addf %2, %4 : vector<8x128xf32>
    %c0_5 = arith.constant 0 : index
    %c0_6 = arith.constant 0 : index
    %6 = vector.load %arg2[%c0_5, %c0_6] : memref<8x8xf32, #tpu.memory_space<vmem>>, vector<8x8xf32>
    %c0_7 = arith.constant 0 : index
    %c0_8 = arith.constant 0 : index
    %7 = vector.load %arg4[%c0_7, %c0_8] : memref<8x128xf32, #tpu.memory_space<vmem>>, vector<8x128xf32>
    %8 = vector.extract_strided_slice %6 {offsets = [0, 0], sizes = [8, 1], strides = [1, 1]} : vector<8x8xf32> to vector<8x1xf32>
    %9 = vector.extract_strided_slice %7 {offsets = [0, 0], sizes = [1, 128], strides = [1, 1]} : vector<8x128xf32> to vector<1x128xf32>
    %10 = vector.broadcast %8 : vector<8x1xf32> to vector<8x128xf32>
    %11 = vector.broadcast %9 : vector<1x128xf32> to vector<8x128xf32>
    %12 = arith.mulf %10, %11 : vector<8x128xf32>
    %13 = arith.addf %5, %12 : vector<8x128xf32>
    %14 = vector.extract_strided_slice %6 {offsets = [0, 1], sizes = [8, 1], strides = [1, 1]} : vector<8x8xf32> to vector<8x1xf32>
    %15 = vector.extract_strided_slice %7 {offsets = [1, 0], sizes = [1, 128], strides = [1, 1]} : vector<8x128xf32> to vector<1x128xf32>
    %16 = vector.broadcast %14 : vector<8x1xf32> to vector<8x128xf32>
    %17 = vector.broadcast %15 : vector<1x128xf32> to vector<8x128xf32>
    %18 = arith.mulf %16, %17 : vector<8x128xf32>
    %19 = arith.addf %13, %18 : vector<8x128xf32>
    %20 = vector.extract_strided_slice %6 {offsets = [0, 2], sizes = [8, 1], strides = [1, 1]} : vector<8x8xf32> to vector<8x1xf32>
    %21 = vector.extract_strided_slice %7 {offsets = [2, 0], sizes = [1, 128], strides = [1, 1]} : vector<8x128xf32> to vector<1x128xf32>
    %22 = vector.broadcast %20 : vector<8x1xf32> to vector<8x128xf32>
    %23 = vector.broadcast %21 : vector<1x128xf32> to vector<8x128xf32>
    %24 = arith.mulf %22, %23 : vector<8x128xf32>
    %25 = arith.addf %19, %24 : vector<8x128xf32>
    %26 = vector.extract_strided_slice %6 {offsets = [0, 3], sizes = [8, 1], strides = [1, 1]} : vector<8x8xf32> to vector<8x1xf32>
    %27 = vector.extract_strided_slice %7 {offsets = [3, 0], sizes = [1, 128], strides = [1, 1]} : vector<8x128xf32> to vector<1x128xf32>
    %28 = vector.broadcast %26 : vector<8x1xf32> to vector<8x128xf32>
    %29 = vector.broadcast %27 : vector<1x128xf32> to vector<8x128xf32>
    %30 = arith.mulf %28, %29 : vector<8x128xf32>
    %31 = arith.addf %25, %30 : vector<8x128xf32>
    %32 = vector.extract_strided_slice %6 {offsets = [0, 4], sizes = [8, 1], strides = [1, 1]} : vector<8x8xf32> to vector<8x1xf32>
    %33 = vector.extract_strided_slice %7 {offsets = [4, 0], sizes = [1, 128], strides = [1, 1]} : vector<8x128xf32> to vector<1x128xf32>
    %34 = vector.broadcast %32 : vector<8x1xf32> to vector<8x128xf32>
    %35 = vector.broadcast %33 : vector<1x128xf32> to vector<8x128xf32>
    %36 = arith.mulf %34, %35 : vector<8x128xf32>
    %37 = arith.addf %31, %36 : vector<8x128xf32>
    %cst_9 = arith.constant dense<0.000000e+00> : vector<8xf32>
    %38 = vector.multi_reduction <add>, %37, %cst_9 [1] : vector<8x128xf32> to vector<8xf32>
    %39 = vector.shape_cast %38 : vector<8xf32> to vector<8x1xf32>
    %cst_10 = arith.constant 7.812500e-03 : f32
    %40 = vector.broadcast %cst_10 : f32 to vector<8x1xf32>
    %41 = arith.mulf %39, %40 : vector<8x1xf32>
    %42 = vector.broadcast %41 : vector<8x1xf32> to vector<8x128xf32>
    %43 = arith.subf %37, %42 : vector<8x128xf32>
    %44 = arith.mulf %43, %43 : vector<8x128xf32>
    %cst_11 = arith.constant dense<0.000000e+00> : vector<8xf32>
    %45 = vector.multi_reduction <add>, %44, %cst_11 [1] : vector<8x128xf32> to vector<8xf32>
    %46 = vector.shape_cast %45 : vector<8xf32> to vector<8x1xf32>
    %cst_12 = arith.constant 7.812500e-03 : f32
    %47 = vector.broadcast %cst_12 : f32 to vector<8x1xf32>
    %48 = arith.mulf %46, %47 : vector<8x1xf32>
    %cst_13 = arith.constant 9.99999996E-13 : f32
    %49 = vector.broadcast %cst_13 : f32 to vector<8x1xf32>
    %50 = arith.addf %48, %49 : vector<8x1xf32>
    %51 = math.rsqrt %50 : vector<8x1xf32>
    %52 = vector.broadcast %51 : vector<8x1xf32> to vector<8x128xf32>
    %53 = arith.mulf %43, %52 : vector<8x128xf32>
    %c0_14 = arith.constant 0 : index
    %c0_15 = arith.constant 0 : index
    %54 = vector.load %arg6[%c0_14, %c0_15] : memref<1x128xf32, #tpu.memory_space<vmem>>, vector<1x128xf32>
    %55 = vector.broadcast %54 : vector<1x128xf32> to vector<8x128xf32>
    %56 = arith.mulf %53, %55 : vector<8x128xf32>
    %c0_16 = arith.constant 0 : index
    %c0_17 = arith.constant 0 : index
    %57 = vector.load %arg7[%c0_16, %c0_17] : memref<1x128xf32, #tpu.memory_space<vmem>>, vector<1x128xf32>
    %58 = vector.broadcast %57 : vector<1x128xf32> to vector<8x128xf32>
    %59 = arith.addf %56, %58 : vector<8x128xf32>
    %c0_18 = arith.constant 0 : index
    %c0_19 = arith.constant 0 : index
    %60 = vector.load %arg8[%c0_18, %c0_19] : memref<8x128xf32, #tpu.memory_space<vmem>>, vector<8x128xf32>
    tpu.vector_store %arg8[%c0_18, %c0_19], %59 {strides = array<i32>} : memref<8x128xf32, #tpu.memory_space<vmem>>, vector<8x128xf32>,
    return
  }
  func.func @transform_0(%arg0: i32) -> (i32, i32) {
    %c0_i32 = arith.constant 0 : i32
    %c0_i32_0 = arith.constant 0 : i32
    return %arg0, %c0_i32 : i32, i32
  }
  func.func @transform_1(%arg0: i32) -> (i32, i32) {
    %c0_i32 = arith.constant 0 : i32
    %c0_i32_0 = arith.constant 0 : i32
    return %arg0, %c0_i32 : i32, i32
  }
  func.func @transform_2(%arg0: i32) -> (i32, i32) {
    %c0_i32 = arith.constant 0 : i32
    %c0_i32_0 = arith.constant 0 : i32
    %c0_i32_1 = arith.constant 0 : i32
    return %c0_i32, %c0_i32_0 : i32, i32
  }
  func.func @transform_3(%arg0: i32) -> (i32, i32) {
    %c0_i32 = arith.constant 0 : i32
    %c0_i32_0 = arith.constant 0 : i32
    %c0_i32_1 = arith.constant 0 : i32
    return %c0_i32, %c0_i32_0 : i32, i32
  }
  func.func @transform_4(%arg0: i32) -> (i32, i32) {
    %c0_i32 = arith.constant 0 : i32
    %c0_i32_0 = arith.constant 0 : i32
    %c0_i32_1 = arith.constant 0 : i32
    return %c0_i32, %c0_i32_0 : i32, i32
  }
  func.func @transform_5(%arg0: i32) -> (i32, i32) {
    %c0_i32 = arith.constant 0 : i32
    %c0_i32_0 = arith.constant 0 : i32
    %c0_i32_1 = arith.constant 0 : i32
    return %c0_i32, %c0_i32_0 : i32, i32
  }
  func.func @transform_6(%arg0: i32) -> (i32, i32) {
    %c0_i32 = arith.constant 0 : i32
    %c0_i32_0 = arith.constant 0 : i32
    %c0_i32_1 = arith.constant 0 : i32
    return %c0_i32, %c0_i32_0 : i32, i32
  }
  func.func @transform_7(%arg0: i32) -> (i32, i32) {
    %c0_i32 = arith.constant 0 : i32
    %c0_i32_0 = arith.constant 0 : i32
    return %arg0, %c0_i32 : i32, i32
  }
}

</mosaic_0001>

<bundles_post_ra>
// kernel: tpu_custom_call.1
= control target key start
LH: loop header
LB: loop body
LE: loop exit
PB: predicated region body
PF: predicated region fallthrough
CT: control target
= control target key end

     0   :  { %6 = vsyncpa [#allocation3], 0  ;;  %s481_s0 = inlined_call_operand.hbm [shape: f32[8,128], index: 0, kind: input, shape index: {}]   ;;  %s482_s1 = inlined_call_operand.hbm [shape: f32[16,128], index: 1, kind: output, shape index: {}]  }
   0x1   :  { %7 = vsyncpa [#allocation4], 0 }
   0x2   :  { %9 = vsyncpa [#allocation4 + $0x1], 0  ;;  %s351_s6 = smov 0   ;;  %s353_s7 = smov 0  }
   0x3   :  { %s355_s8 = smov 0   ;;  %s357_s9 = smov 0  }
   0x4 LB: > { %s372_s10 = sadd.s32 4294967295, %s337_s9   ;;  %s183_s11 = sadd.s32 4294967294, %s337_s9   ;;  %s337_s9 = sphi %s357_s9, %s498_s9   ;;  %s333_s8 = sphi %s355_s8, %s497_s8   ;;  %s329_s7 = sphi %s353_s7, %s496_s7   ;;  %s325_s6 = sphi %s351_s6, %s495_s6  }
   0x5   : > { %s376_s12 = sadd.s32 1, %s337_s9   ;;  %s43_s13 = sadd.s32 1, %s333_s8 }
   0x6   : > { %s40_s14 = ssub.s32 %s337_s9, %s376_s12  ;;  %p53_p0 = scmp.ne.s32.totalorder %s333_s8, %s329_s7 }
   0x7   : > { %p41_p1 = scmp.eq.s32.totalorder %s40_s14, 0  ;;  %p54_p2 = scmp.eq.s32.totalorder %s372_s10, 1 }
   0x8   : > { %p59_p3 = scmp.ne.s32.totalorder %s329_s7, %s325_s6  ;;  %p60_p4 = scmp.eq.s32.totalorder %s183_s11, 1 }
   0x9   : > { %s387_s15 = scalar_select %p41_p1, %s333_s8, %s43_s13  }
   0xa   : > { %p389_p5 = por %p54_p2, %p53_p0  ;;  %p393_p6 = por %p60_p4, %p59_p3 }
   0xb   : > { %p184_p7 = scmp.ge.s32.totalorder %s337_s9, 1  ;;  %p67_p8 = scmp.lt.s32.totalorder %s337_s9, 3 }
   0xc   : > { %s486_s16 = scalar_select %p389_p5, 1, 0 }
   0xd   : > { %s487_s17 = scalar_select %p393_p6, 1, 0 }
   0xe   : > { %p483_p9 = scmp.eq.s32.totalorder %s372_s10, 0  ;;  %p400_p10 = pnand %p184_p7, %p67_p8 }
   0xf   : > { %s339_s19 = smov [#allocation2]   ;;  %s243_s24 = scalar_lea.hbm %s481_s0, 128 }
  0x10   : > { %s488_s18 = scalar_select %p400_p10, 1, 0 }
  0x11   : > { %s80_s20 = sshll.u32 %s339_s19, 4  ;;  %p199_p11 = pneg %p400_p10  ;;  %s81_s20 = int_to_ptr.vmem [resolvable:$true] %s80_s20 }
  0x12   : > { %p244_p13 = scmp.ne.s32.totalorder %s481_s0, %s243_s24  ;;  %p250_p3 = scmp.lt.u32.totalorder %s243_s24, %s481_s0 }
  0x13   : > { %p408_p12 = pnand %p483_p9, %p199_p11 }
  0x15   : > { %p245_p0 = pneg %p408_p12 }
  0x17   : > { %p246_p1 = pnand %p245_p0, %p244_p13 }
  0x19   : > { %p247_p2 = pneg %p246_p1 }
  0x1b   : > { %p252_p4 = pnand %p250_p3, %p247_p2 }
  0x1d   : > { %255 = shalt.err (!%p252_p4)
}
  0x1e   : > { %s256_s29 = scalar_lea.vmem %s81_s20, 128  ;;  %p264_p9 = scmp.lt.s32.totalorder %s81_s20, %s81_s20 }
  0x1f   : > { %p257_p7 = scmp.ne.s32.totalorder %s81_s20, %s256_s29  ;;  %p265_p6 = scmp.lt.s32.totalorder %s256_s29, %s256_s29 }
  0x21   : > { %p259_p8 = pnand %p257_p7, %p245_p0  ;;  %p266_p5 = por %p265_p6, %p264_p9 }
  0x23   : > { %p260_p11 = pneg %p259_p8 }
  0x25   : > { %p267_p10 = pnand %p266_p5, %p260_p11 }
  0x27   : > { %270 = shalt.err (!%p267_p10)
}
  0x28   : > { %202 = dma.hbm_to_vmem [thread:$0]  (!%p408_p12), %s481_s0, 128, %s81_s20, [#allocation3]  }
  0x29   : > { %p490_p13 = scmp.ne.s32.totalorder %s488_s18, 0 }
  0x2a   : > { %p491_p1 = scmp.eq.s32.totalorder (!%p490_p13), %s372_s10, 0 }
  0x2b   : > { %93 = sbr.rel (%p490_p13) target bundleno = 77 (0x4d), region = 24 }
  0x32   : > { %316 = dma.done.wait (%p491_p1), [#allocation3], 128   ;;  %p492_p0 = pmov %p491_p1 }
  0x33   : > { %s105_s3 = sand.u32 1, %s329_s7   ;;  %s190_s13 = sshll.u32 %s372_s10, 7  ;;  %v108_v0 = vld [vmem:[#allocation2] sm:$0xff] }
  0x34   : > { %318 = vsyncadd (%p492_p0), [#allocation3], 4294967168  ;;  %s188_s4 = sshll.u32 %s105_s3, 3  ;;  %s441_s18 = scalar_lea.hbm %s482_s1, %s190_s13 }
  0x35   : > { %s107_s5 = scalar_lea.vmem [#allocation5], %s188_s4  ;;  %s111_s20 = scalar_lea.sflag [#allocation4], %s105_s3 }
  0x36   : > { %s124_s11 = sshll.u32 %s107_s5, 4  ;;  %109 = vst [vmem:[%s107_s5] sm:$0xff] %v108_v0  ;;  %p493_p6 = scmp.ne.s32.totalorder %s486_s16, 0  ;;  %s436_s11 = int_to_ptr.vmem [resolvable:$true] %s124_s11 }
  0x37   : > { %s271_s21 = scalar_lea.vmem %s436_s11, 128  ;;  %s340_s22 = smov [#allocation5]  }
  0x38   : > { %p272_p5 = scmp.ne.s32.totalorder %s436_s11, %s271_s21  ;;  %s275_s10 = sshll.u32 %s340_s22, 4  ;;  %s276_s10 = int_to_ptr.vmem [resolvable:$false] %s275_s10 }
  0x39   : > { %s277_s23 = scalar_lea.vmem %s276_s10, 256  ;;  %p278_p12 = scmp.lt.s32.totalorder %s436_s11, %s276_s10 }
  0x3a   : > { %p273_p9 = pnand %p272_p5, %p493_p6  ;;  %p279_p2 = scmp.lt.s32.totalorder %s277_s23, %s271_s21 }
  0x3c   : > { %p274_p10 = pneg %p273_p9  ;;  %p280_p3 = por %p279_p2, %p278_p12 }
  0x3e   : > { %p281_p4 = pnand %p280_p3, %p274_p10 }
  0x40   : > { %284 = shalt.err (!%p281_p4)
}
  0x41   : > { %s285_s24 = scalar_lea.hbm %s441_s18, 128  ;;  %s289_s27 = scalar_lea.hbm %s482_s1, 256 }
  0x42   : > { %p286_p7 = scmp.ne.s32.totalorder %s441_s18, %s285_s24  ;;  %p290_p13 = scmp.lt.u32.totalorder %s441_s18, %s482_s1 }
  0x43   : > { %p291_p1 = scmp.lt.u32.totalorder %s289_s27, %s285_s24  ;;  %p293_p5 = scmp.lt.u32.totalorder %s285_s24, %s441_s18 }
  0x44   : > { %p287_p8 = pnand %p286_p7, %p493_p6 }
  0x45   : > { %p292_p0 = por %p291_p1, %p290_p13 }
  0x46   : > { %p288_p11 = pneg %p287_p8 }
  0x47   : > { %p294_p9 = por %p293_p5, %p292_p0 }
  0x49   : > { %p295_p10 = pnand %p294_p9, %p288_p11 }
  0x4b   : > { %298 = shalt.err (!%p295_p10)
}
  0x4c   : > { %197 = dma.vmem_to_hbm [thread:$0]  (%p493_p6), %s436_s11, 128, %s441_s18, %s111_s20  }
  0x4d PF: > { %p209_p12 = scmp.ge.s32.totalorder %s337_s9, 2  ;;  %s136_s30 = sand.u32 1, %s325_s6  }
  0x4e   : > { %p494_p2 = scmp.ne.s32.totalorder %s487_s17, 0  ;;  %s137_s2 = scalar_lea.sflag [#allocation4], %s136_s30 }
  0x50   : > { %p204_p3 = pnand %p209_p12, %p494_p2 }
  0x52   : > { %320 = dma.done.wait (!%p204_p3), %s137_s2, 128  }
  0x53   : > { %322 = vsyncadd (!%p204_p3), %s137_s2, 4294967168  ;;  %p12_p4 = scmp.ge.s32.totalorder %s376_s12, 4   ;;  %s495_s6 = smov %s329_s7 }
  0x54   : > { %s496_s7 = smov %s333_s8  ;;  %s497_s8 = smov %s387_s15 }
  0x55   : > { %s498_s9 = smov %s376_s12  ;;  %14 = sbr.rel (!%p12_p4) target bundleno = 4 (0x4), region = 61 }
  0x5c   :  { %142 = vsyncpa [#allocation3], 1 }
  0x5d   :  { %144 = vsyncpa [#allocation3 + $0x1], 1 }
  0x5e   :  { %145 = vsyncpa [#allocation4], 1 }
  0x5f   :  { %147 = vsyncpa [#allocation4 + $0x1], 1 }

// kernel: tpu_custom_call.1
= control target key start
LH: loop header
LB: loop body
LE: loop exit
PB: predicated region body
PF: predicated region fallthrough
CT: control target
= control target key end

     0   :  { %12 = vsyncpa [#allocation3], 0  ;;  %s975_s0 = inlined_call_operand.vmem [shape: bf16[16,64], index: 0, kind: input, shape index: {}]   ;;  %s976_s1 = inlined_call_operand.vmem [shape: f32[16,8], index: 1, kind: input, shape index: {}]   ;;  %s977_s2 = inlined_call_operand.hbm [shape: bf16[64,128], index: 2, kind: input, shape index: {}]   ;;  %s978_s3 = inlined_call_operand.vmem [shape: f32[8,128], index: 3, kind: input, shape index: {}]   ;;  %s979_s4 = inlined_call_operand.vmem [shape: f32[1,128], index: 4, kind: input, shape index: {}]   ;;  %s980_s5 = inlined_call_operand.vmem [shape: f32[1,128], index: 5, kind: input, shape index: {}]   ;;  %s981_s6 = inlined_call_operand.vmem [shape: f32[1,128], index: 6, kind: input, shape index: {}]   ;;  %s982_s7 = inlined_call_operand.hbm [shape: f32[16,128], index: 7, kind: output, shape index: {}]  }
   0x1   :  { %13 = vsyncpa [#allocation4], 0 }
   0x2   :  { %15 = vsyncpa [#allocation4 + $0x1], 0  ;;  %s825_s24 = smov 0   ;;  %s827_s25 = smov 0  }
   0x3   :  { %s829_s26 = smov 0   ;;  %s831_s27 = smov 0  }
   0x4 LB: > { %s846_s28 = sadd.s32 4294967295, %s772_s27   ;;  %s569_s29 = sadd.s32 4294967294, %s772_s27   ;;  %s772_s27 = sphi %s831_s27, %s998_s27   ;;  %s768_s26 = sphi %s829_s26, %s997_s26   ;;  %s764_s25 = sphi %s827_s25, %s996_s25   ;;  %s760_s24 = sphi %s825_s24, %s995_s24  }
   0x5   : > { %s850_s30 = sadd.s32 1, %s772_s27   ;;  %s185_s8 = sadd.s32 1, %s768_s26 }
   0x6   : > { %s182_s9 = ssub.s32 %s772_s27, %s850_s30  ;;  %p195_p0 = scmp.ne.s32.totalorder %s768_s26, %s764_s25 }
   0x7   : > { %p183_p1 = scmp.eq.s32.totalorder %s182_s9, 0  ;;  %p196_p2 = scmp.eq.s32.totalorder %s846_s28, 1 }
   0x8   : > { %p201_p3 = scmp.ne.s32.totalorder %s764_s25, %s760_s24  ;;  %p202_p4 = scmp.eq.s32.totalorder %s569_s29, 1 }
   0x9   : > { %s861_s10 = scalar_select %p183_p1, %s768_s26, %s185_s8  }
   0xa   : > { %p863_p5 = por %p196_p2, %p195_p0  ;;  %p867_p6 = por %p202_p4, %p201_p3 }
   0xb   : > { %p570_p7 = scmp.ge.s32.totalorder %s772_s27, 1  ;;  %p209_p8 = scmp.lt.s32.totalorder %s772_s27, 3 }
   0xc   : > { %s986_s11 = scalar_select %p863_p5, 1, 0 }
   0xd   : > { %s987_s12 = scalar_select %p867_p6, 1, 0 }
   0xe   : > { %p983_p9 = scmp.eq.s32.totalorder %s846_s28, 0  ;;  %p874_p10 = pnand %p570_p7, %p209_p8 }
   0xf   : > { %s774_s14 = smov [#allocation2]   ;;  %s678_s19 = scalar_lea.hbm %s977_s2, 512 }
  0x10   : > { %s988_s13 = scalar_select %p874_p10, 1, 0 }
  0x11   : > { %s221_s15 = sshll.u32 %s774_s14, 4  ;;  %p613_p11 = pneg %p874_p10  ;;  %s222_s15 = int_to_ptr.vmem [resolvable:$true] %s221_s15 }
  0x12   : > { %p679_p13 = scmp.ne.s32.totalorder %s977_s2, %s678_s19  ;;  %p685_p3 = scmp.lt.u32.totalorder %s678_s19, %s977_s2 }
  0x13   : > { %p882_p12 = pnand %p983_p9, %p613_p11 }
  0x15   : > { %p680_p0 = pneg %p882_p12 }
  0x17   : > { %p681_p1 = pnand %p680_p0, %p679_p13 }
  0x19   : > { %p682_p2 = pneg %p681_p1 }
  0x1b   : > { %p687_p4 = pnand %p685_p3, %p682_p2 }
  0x1d   : > { %690 = shalt.err (!%p687_p4)
}
  0x1e   : > { %s691_s29 = scalar_lea.vmem %s222_s15, 512  ;;  %p699_p9 = scmp.lt.s32.totalorder %s222_s15, %s222_s15 }
  0x1f   : > { %p692_p7 = scmp.ne.s32.totalorder %s222_s15, %s691_s29  ;;  %p700_p6 = scmp.lt.s32.totalorder %s691_s29, %s691_s29 }
  0x21   : > { %p694_p8 = pnand %p692_p7, %p680_p0  ;;  %p701_p5 = por %p700_p6, %p699_p9 }
  0x23   : > { %p695_p11 = pneg %p694_p8 }
  0x25   : > { %p702_p10 = pnand %p701_p5, %p695_p11 }
  0x27   : > { %705 = shalt.err (!%p702_p10)
}
  0x28   : > { %s775_s8 = smov 64   ;;  %s776_s9 = smov 4  }
  0x29   : > { %616 = dma.hbm_to_vmem [thread:$0]  (!%p882_p12), %s977_s2, 512, %s222_s15, [#allocation3], %s775_s8, %s775_s8, %s776_s9  }
  0x2a   : > { %p990_p13 = scmp.ne.s32.totalorder %s988_s13, 0 }
  0x2b   : > { %p991_p1 = scmp.eq.s32.totalorder (!%p990_p13), %s846_s28, 0 }
  0x2c   : > { %263 = sbr.rel (%p990_p13) target bundleno = 620 (0x26c), region = 48 }
  0x33   : > { %751 = dma.done.wait (%p991_p1), [#allocation3], 512   ;;  %p992_p0 = pmov %p991_p1 }
  0x34   : > { %p298_p5 = scmp.lt.s32.totalorder %s846_s28, 1  ;;  %v777_v0 = vmov 0.0   ;;  %vm778_vm0 = vmmov 0   ;;  %v779_v1 = vmov 0   ;;  %v780_v2 = vmov 2   ;;  %v672_v3 = vld [vmem:[#allocation2] sm:$0xff]  }
  0x35   : > { %753 = vsyncadd (%p992_p0), [#allocation3], 4294966784  ;;  %595 = vmatprep.subr.bf16.mxu0 %v777_v0  ;;  %603 = vmatprep.mubr.msk.bf16.mxu0 %vm778_vm0, %v777_v0  ;;  %v673_v4 = vld [vmem:[#allocation2 + $0x8] sm:$0xff]   ;;  %v674_v6 = vld [vmem:[#allocation2 + $0x10] sm:$0xff]   ;;  %v781_v7 = vmov 1   ;;  %v782_v8 = vmov 3   ;;  %v398_v12 = vlaneseq }
  0x36   : > { %666 = vset.pattern.permute.xlu0 %v779_v1  ;;  %668 = vset.pattern.permute.xlu1 %v780_v2  ;;  %s299_s15 = scalar_select %p298_p5, %s846_s28, 1  ;;  %v675_v9 = vld [vmem:[#allocation2 + $0x18] sm:$0xff]   ;;  %vm347_vm1 = vcmask 523264   ;;  %v783_v11 = vmov 4   ;;  %v392_v18 = vld [vmem:[%s978_s3] sm:$0xff] }
  0x37   : > { %596 = vmatpush3.bf16.msra.mxu0 %v672_v3  ;;  %v399_v13 = vshrl.u32 %v398_v12, 7  ;;  %v578_v22 = vld [vmem:[%s979_s4] ss:$0 sm:$0xff]  ;;  %s295_s17 = sand.u32 1, %s764_s25   ;;  %p993_p9 = scmp.ne.s32.totalorder %s986_s11, 0 }
  0x38   : > { %s577_s13 = sshll.u32 %s299_s15, 3  ;;  %597 = vmatprep.subr.bf16.mxu0 %v777_v0  ;;  %s576_s20 = sshll.u32 %s299_s15, 2  ;;  %v584_v54 = vld [vmem:[%s980_s5] ss:$0 sm:$0xff] }
  0x39   : > { %s305_s19 = scalar_lea.vmem %s976_s1, %s577_s13  ;;  %s301_s23 = scalar_lea.vmem %s975_s0, %s576_s20  ;;  %v400_v16 = vsub.s32 0, %v399_v13  ;;  %v410_v17 = vsub.s32 1, %v399_v13  ;;  %v420_v20 = vsub.s32 2, %v399_v13  ;;  %v430_v25 = vsub.s32 3, %v399_v13  ;;  %v585_v56 = vld [vmem:[%s981_s6] ss:$0 sm:$0xff] }
  0x3a   : > { %v391_v5 = vld [vmem:[%s305_s19] sm:$0xff]  ;;  %v440_v26 = vsub.s32 4, %v399_v13  ;;  %s575_s15 = sshll.u32 %s295_s17, 3  ;;  %s587_s20 = sshll.u32 %s846_s28, 7 }
  0x3b   : > { %395 = vperm.xlu0 %666, %v391_v5   ;;  %415 = vperm.xlu1 %668, %v391_v5   ;;  %v307_v10 = vld [vmem:[%s301_s23] sm:$0xf]  ;;  %v401_v19 = vrot.slane %v392_v18, %v400_v16  ;;  %v411_v21 = vrot.slane %v392_v18, %v410_v17  ;;  %v421_v29 = vrot.slane %v392_v18, %v420_v20  ;;  %s297_s21 = scalar_lea.vmem [#allocation5], %s575_s15  ;;  %s933_s8 = scalar_lea.hbm %s982_s7, %s587_s20 }
  0x3c   : > { %598 = vmatpush3.bf16.msra.mxu0 %v673_v4  ;;  %v431_v35 = vrot.slane %v392_v18, %v430_v25  ;;  %v441_v37 = vrot.slane %v392_v18, %v440_v26  ;;  %s486_s22 = sshll.u32 %s297_s21, 4  ;;  %s473_s9 = scalar_lea.sflag [#allocation4], %s295_s17  ;;  %s935_s22 = int_to_ptr.vmem [resolvable:$true] %s486_s22 }
  0x3d   : > { %599 = vmatprep.subr.bf16.mxu0 %v777_v0  ;;  %s706_s14 = scalar_lea.vmem %s935_s22, 128  ;;  %s784_s28 = smov [#allocation5]  }
  0x3e   : > { %p707_p6 = scmp.ne.s32.totalorder %s935_s22, %s706_s14  ;;  %s710_s15 = sshll.u32 %s784_s28, 4  ;;  %s711_s15 = int_to_ptr.vmem [resolvable:$false] %s710_s15 }
  0x3f   : > { %667 = vset.pattern.permute.xlu0 %v781_v7  ;;  %669 = vset.pattern.permute.xlu1 %v782_v8  ;;  %s712_s13 = scalar_lea.vmem %s711_s15, 256  ;;  %p713_p2 = scmp.lt.s32.totalorder %s935_s22, %s711_s15 }
  0x40   : > { %600 = vmatpush3.bf16.msra.mxu0 %v674_v6  ;;  %405 = vperm.xlu0 %667, %v391_v5   ;;  %p708_p10 = pnand %p707_p6, %p993_p9  ;;  %p714_p3 = scmp.lt.s32.totalorder %s712_s13, %s706_s14 }
  0x41   : > { %601 = vmatprep.subr.bf16.mxu0 %v777_v0  ;;  %425 = vperm.xlu1 %669, %v391_v5  }
  0x42   : > { %p709_p12 = pneg %p708_p10  ;;  %p715_p4 = por %p714_p3, %p713_p2 }
  0x44   : > { %602 = vmatpush3.bf16.msra.mxu0 %v675_v9  ;;  %671 = vset.pattern.permute.xlu0 %v783_v11  ;;  %p716_p7 = pnand %p715_p4, %p709_p12 }
  0x45   : > { %670 = vset.pattern.permute.xlu1 %v783_v11 }
  0x46   : > { %435 = vperm.xlu1 %670, %v391_v5  }
  0x47   : > { %604 = vmatmul.mubr.msk.bf16.vlgmr.msra.gmra.mrb[0].mxu0 %vm347_vm1, %v307_v10 }
  0xba   : > { %v396_v14 = vpop.permute.xlu0 %395  ;;  %v416_v15 = vpop.permute.xlu1 %415 }
  0xbb   : > { %v402_v28 = vmul.f32 %v401_v19, %v396_v14  ;;  %v422_v39 = vmul.f32 %v421_v29, %v416_v15 }
  0xbf   : > { %v406_v23 = vpop.permute.xlu0 %405 }
  0xc0   : > { %v426_v24 = vpop.permute.xlu1 %425  ;;  %v412_v32 = vmul.f32 %v411_v21, %v406_v23 }
  0xc1   : > { %v432_v42 = vmul.f32 %v431_v35, %v426_v24 }
  0xc5   : > { %v436_v38 = vpop.permute.xlu1 %435 }
  0xc6   : > { %v442_v43 = vmul.f32 %v441_v37, %v436_v38 }
 0x11a   : > { %v385_v27 = vpop.f32.mrb[0].mxu0 }
 0x11b   : > { %v386_v30 = vadd.f32 %v578_v22, %v385_v27  ;;  %v605_v31 = vpop.f32.mrb[1].mxu0 }
 0x11c   : > { %v388_v33 = vpop.f32.mrb[2].mxu0 }
 0x11d   : > { %v403_v34 = vadd.f32 %v402_v28, %v386_v30  ;;  %v606_v36 = vpop.f32.mrb[3].mxu0 }
 0x11f   : > { %v413_v40 = vadd.f32 %v412_v32, %v403_v34 }
 0x121   : > { %v423_v41 = vadd.f32 %v422_v39, %v413_v40 }
 0x123   : > { %v433_v44 = vadd.f32 %v432_v42, %v423_v41 }
 0x125   : > { %v443_v45 = vadd.f32 %v442_v43, %v433_v44 }
 0x127   : > { %444 = vadd.xlane.f32.xlu0 %v443_v45 }
 0x1b4   : > { %v445_v46 = vpop.xlane.xlu0 %444 }
 0x1b5   : > { %v446_v47 = vmul.f32 0.0078125, %v445_v46 }
 0x1b7   : > { %v447_v48 = vsub.f32 %v443_v45, %v446_v47 }
 0x1b9   : > { %v448_v49 = vmul.f32 %v447_v48, %v447_v48 }
 0x1bb   : > { %449 = vadd.xlane.f32.xlu1 %v448_v49 }
 0x248   : > { %v450_v50 = vpop.xlane.xlu1 %449 }
 0x249   : > { %v451_v51 = vmul.f32 0.0078125, %v450_v50 }
 0x24b   : > { %v452_v52 = vadd.f32 1e-12, %v451_v51 }
 0x24d   : > { %676 = vrsqrt.f32 %v452_v52 }
 0x257   : > { %v677_v53 = vpop.eup %676 }
 0x258   : > { %v454_v55 = vmul.f32 %v677_v53, %v447_v48 }
 0x25a   : > { %v462_v57 = vmul.f32 %v584_v54, %v454_v55 }
 0x25c   : > { %v470_v58 = vadd.f32 %v585_v56, %v462_v57 }
 0x25e   : > { %471 = vst [vmem:[%s297_s21] sm:$0xff] %v470_v58 }
 0x25f   : > { %719 = shalt.err (!%p716_p7)
}
 0x260   : > { %s720_s17 = scalar_lea.hbm %s933_s8, 128  ;;  %s724_s19 = scalar_lea.hbm %s982_s7, 256 }
 0x261   : > { %p721_p8 = scmp.ne.s32.totalorder %s933_s8, %s720_s17  ;;  %p725_p1 = scmp.lt.u32.totalorder %s933_s8, %s982_s7 }
 0x262   : > { %p726_p0 = scmp.lt.u32.totalorder %s724_s19, %s720_s17  ;;  %p728_p6 = scmp.lt.u32.totalorder %s720_s17, %s933_s8 }
 0x263   : > { %p722_p11 = pnand %p721_p8, %p993_p9 }
 0x264   : > { %p727_p5 = por %p726_p0, %p725_p1 }
 0x265   : > { %p723_p13 = pneg %p722_p11 }
 0x266   : > { %p729_p10 = por %p728_p6, %p727_p5 }
 0x268   : > { %p730_p12 = pnand %p729_p10, %p723_p13 }
 0x26a   : > { %733 = shalt.err (!%p730_p12)
}
 0x26b   : > { %611 = dma.vmem_to_hbm [thread:$0]  (%p993_p9), %s935_s22, 128, %s933_s8, %s473_s9  }
 0x26c PF: > { %p623_p2 = scmp.ge.s32.totalorder %s772_s27, 2  ;;  %s498_s23 = sand.u32 1, %s760_s24  }
 0x26d   : > { %p994_p3 = scmp.ne.s32.totalorder %s987_s12, 0  ;;  %s499_s29 = scalar_lea.sflag [#allocation4], %s498_s23 }
 0x26f   : > { %p618_p4 = pnand %p623_p2, %p994_p3 }
 0x271   : > { %755 = dma.done.wait (!%p618_p4), %s499_s29, 128  }
 0x272   : > { %757 = vsyncadd (!%p618_p4), %s499_s29, 4294967168  ;;  %p18_p7 = scmp.ge.s32.totalorder %s850_s30, 4   ;;  %s995_s24 = smov %s764_s25 }
 0x273   : > { %s996_s25 = smov %s768_s26  ;;  %s997_s26 = smov %s861_s10 }
 0x274   : > { %s998_s27 = smov %s850_s30  ;;  %20 = sbr.rel (!%p18_p7) target bundleno = 4 (0x4), region = 91 }
 0x27b   :  { %504 = vsyncpa [#allocation3], 1 }
 0x27c   :  { %506 = vsyncpa [#allocation3 + $0x1], 1 }
 0x27d   :  { %507 = vsyncpa [#allocation4], 1 }
 0x27e   :  { %509 = vsyncpa [#allocation4 + $0x1], 1 }

</bundles_post_ra>
